<compile_context>
chip_gen: v5e
topology: v5e:2x2
jax: 0.10.0
libtpu: 0.0.40
codegen_flags: <defaults>
</compile_context>

<pallas_src>
import functools

import jax
import jax.numpy as jnp
from jax.experimental import pallas as pl
from jax.experimental.pallas import tpu as pltpu


def _l2_normalize(x):
    # F.normalize(x, p=2, dim=1) == x * rsqrt(max(sum(x^2), (1e-12)^2))
    return x * jax.lax.rsqrt(
        jnp.maximum(jnp.sum(x * x, axis=1, keepdims=True), 1e-24))


def _proxy_dc_loss_kernel(lhs_ref, stacked_ref, tgt_col_ref, dom_col_ref,
                          tgt_row_ref, dom_row_ref, nll_ref, *,
                          scaled_threshold, num_classes):
    # Single lane-dense MXU matmul (bf16 or f32 operands, f32 accumulation):
    #   (TM, D) x (C+B, D)^T -> (TM, C+B)
    #   cols [0, C)   = scale * <feat_n, proxy_n>   (pred)
    #   cols [C, C+B) = scale * <feat_n, feat_n>    (sim)
    logits = jax.lax.dot_general(
        lhs_ref[...], stacked_ref[...], (((1,), (1,)), ((), ())),
        preferred_element_type=jnp.float32)

    tm, n = logits.shape
    tgt_col = tgt_col_ref[...]          # (TM, 1) int32
    dom_col = dom_col_ref[...]          # (TM, 1) int32
    tgt_row = tgt_row_ref[...]          # (1, N) int32 (-1 sentinel on pred cols)
    dom_row = dom_row_ref[...]          # (1, N) int32 (-1 sentinel on pred cols)

    # (1, N) column iota; row broadcast is handled by the elementwise ops.
    col_row = jax.lax.broadcasted_iota(jnp.int32, (1, n), 1)
    is_pred = col_row < num_classes     # (1, N)

    # keep = pred column OR (different class AND same domain AND sim >= thr).
    # Sentinels (-1) on the pred columns never matter: is_pred short-circuits,
    # and labels/domains are assumed non-negative.
    keep = jnp.logical_or(
        is_pred,
        jnp.logical_and(
            jnp.logical_and(tgt_col != tgt_row, dom_col == dom_row),
            logits >= scaled_threshold))

    z = jnp.where(keep, logits, jnp.float32(-jnp.inf))      # (TM, N)

    # log-softmax over the fused [pred | feature_neg] row (pred cols are
    # always kept, so the row max is finite).
    m = jnp.max(z, axis=1, keepdims=True)                    # (TM, 1)
    lse = jnp.log(jnp.sum(jnp.exp(z - m), axis=1, keepdims=True)) + m

    # NLL gather: target[i] < C always lands in the pred block, so only scan
    # the first round_up(C, 128) lanes (lane-aligned slice).
    c_pad = min(n, ((num_classes + 127) // 128) * 128)
    picked = jnp.sum(
        jnp.where(col_row[:, :c_pad] == tgt_col, logits[:, :c_pad], 0.0),
        axis=1, keepdims=True)                               # (TM, 1)

    # Lane-dense output row: per-row negative log-prob.
    nll_ref[...] = (lse - picked).reshape(1, tm)


def _vmem_limit_bytes():
    try:
        cap = int(pltpu.get_tpu_info().vmem_capacity_bytes)
    except Exception:  # no TPU / interpret mode / older jax
        cap = 64 * 1024 * 1024
    # ~100 MiB on 128-MiB parts (v5e/v6e), ~48 MiB on 64-MiB parts (v7x).
    return min(max(cap - 16 * 1024 * 1024, 32 * 1024 * 1024),
               100 * 1024 * 1024)


def _pick_tm(B, N, D, itemsize, vmem_budget):
    for tm in (512, 256, 128, 64, 32, 16, 8):
        if tm > B:
            continue
        resident = 2 * (N * D * itemsize + 2 * N * 4)            # stacked + label/domain rows
        streamed = 2 * (tm * D * itemsize + 2 * tm * 4 + tm * 4)  # lhs tile + cols + out
        slabs = 8 * tm * N * 4                                    # (TM, N) f32 temporaries
        if resident + streamed + slabs <= vmem_budget:
            return tm
    return min(B, 8)


def proxy_dc_loss(feature, target, domain_label, proxy, d_proxy, scale,
                  *, matmul_dtype=jnp.bfloat16):
    """Pallas implementation of ProxyDCLoss.forward.

    d_proxy (and the module's Softplus / label / domains buffers) are never
    used by the reference forward pass.  Assumes scale > 0 and non-negative
    target / domain labels (sentinel columns rely on it).
    """
    del d_proxy  # unused by the reference forward pass
    B, D = feature.shape
    C = proxy.shape[0]
    N = C + B

    feature = feature.astype(jnp.float32)
    proxy = proxy.astype(jnp.float32)

    # Normalization + scale fold hoisted out of the kernel (done once).
    feat_n = _l2_normalize(feature)
    proxy_n = _l2_normalize(proxy)
    stacked = jnp.concatenate([proxy_n, feat_n], axis=0).astype(matmul_dtype)  # (N, D)
    lhs = (feat_n * float(scale)).astype(matmul_dtype)                         # (B, D)

    tgt = target.astype(jnp.int32)
    dom = domain_label.astype(jnp.int32)
    tgt_col = tgt.reshape(B, 1)
    dom_col = dom.reshape(B, 1)
    # Row operands padded on the left with -1 sentinels for the C pred columns
    # (never consulted there: `is_pred` short-circuits the mask).
    tgt_row = jnp.concatenate([jnp.full((C,), -1, jnp.int32), tgt]).reshape(1, N)
    dom_row = jnp.concatenate([jnp.full((C,), -1, jnp.int32), dom]).reshape(1, N)

    vmem_limit = _vmem_limit_bytes()
    itemsize = jnp.dtype(matmul_dtype).itemsize
    TM = _pick_tm(B, N, D, itemsize, vmem_limit // 2)
    grid = (pl.cdiv(B, TM),)

    kernel = functools.partial(_proxy_dc_loss_kernel,
                               scaled_threshold=float(scale) * 1e-6,
                               num_classes=C)
    nll = pl.pallas_call(
        kernel,
        out_shape=jax.ShapeDtypeStruct((1, B), jnp.float32),
        grid=grid,
        in_specs=[
            pl.BlockSpec((TM, D), lambda i: (i, 0)),   # scale*feat_n row tile
            pl.BlockSpec((N, D), lambda i: (0, 0)),    # [proxy_n; feat_n] (resident)
            pl.BlockSpec((TM, 1), lambda i: (i, 0)),   # target column tile
            pl.BlockSpec((TM, 1), lambda i: (i, 0)),   # domain column tile
            pl.BlockSpec((1, N), lambda i: (0, 0)),    # target row (resident)
            pl.BlockSpec((1, N), lambda i: (0, 0)),    # domain row (resident)
        ],
        out_specs=pl.BlockSpec((1, TM), lambda i: (0, i)),   # lane-dense NLL row
        compiler_params=pltpu.CompilerParams(
            dimension_semantics=("parallel",),         # megacore-shard row tiles
            vmem_limit_bytes=vmem_limit),
    )(lhs, stacked, tgt_col, dom_col, tgt_row, dom_row)

    # Per-row NLL is already the negative log-prob: loss = +mean.
    return jnp.mean(nll[0, :])


def _reference_loss(feature, target, domain_label, proxy, scale,
                    matmul_dtype=jnp.float32):
    """Plain-JAX mirror of the PyTorch forward.  With matmul_dtype=f32 this is
    the exact reference; with bf16 it emulates the kernel's MXU operand
    precision (f32 accumulation) for a tight matched-precision check."""
    fn = _l2_normalize(feature.astype(jnp.float32))
    pn = _l2_normalize(proxy.astype(jnp.float32))
    lhs = (fn * float(scale)).astype(matmul_dtype)     # scale folded like the kernel
    fn_m = fn.astype(matmul_dtype)
    pn_m = pn.astype(matmul_dtype)
    pred = jnp.dot(lhs, pn_m.T, preferred_element_type=jnp.float32)
    sim = jnp.dot(lhs, fn_m.T, preferred_element_type=jnp.float32)
    label_matrix = target[:, None] == target[None, :]
    domain_matrix = domain_label[:, None] == domain_label[None, :]
    mask = (~label_matrix) & domain_matrix
    feature_neg = jnp.where(mask & (sim >= float(scale) * 1e-6), sim, -jnp.inf)
    logits = jnp.concatenate([pred, feature_neg], axis=1)
    logp = jax.nn.log_softmax(logits, axis=1)
    picked = jnp.take_along_axis(logp, target[:, None], axis=1)[:, 0]
    return -jnp.mean(picked)


if __name__ == "__main__":
    key = jax.random.PRNGKey(0)
    k1, k2, k3, k4, k5 = jax.random.split(key, 5)

    B, D = 8, 32            # batch, feature dim
    num_classes = 4
    domain_classes = 3
    scale = 12.0

    feature = jax.random.normal(k1, (B, D), dtype=jnp.float32)
    target = jax.random.randint(k2, (B,), 0, num_classes, dtype=jnp.int32)
    domain_label = jax.random.randint(k3, (B,), 0, domain_classes,
                                      dtype=jnp.int32)
    proxy = jax.random.normal(k4, (num_classes, D), dtype=jnp.float32)
    d_proxy = jax.random.normal(k5, (domain_classes, D), dtype=jnp.float32)

    # 1) f32-operand path vs. the exact f32 reference (strict semantics check).
    loss_f32 = jax.block_until_ready(
        proxy_dc_loss(feature, target, domain_label, proxy, d_proxy, scale,
                      matmul_dtype=jnp.float32))
    ref_f32 = _reference_loss(feature, target, domain_label, proxy, scale,
                              matmul_dtype=jnp.float32)
    assert jnp.allclose(loss_f32, ref_f32, rtol=1e-5, atol=1e-5), (loss_f32, ref_f32)

    # 2) Default bf16-operand path vs. the matched-precision reference
    #    (bf16 vs f32 differ at ~1e-3 level only through MXU operand rounding).
    loss_bf16 = jax.block_until_ready(
        proxy_dc_loss(feature, target, domain_label, proxy, d_proxy, scale))
    ref_bf16 = _reference_loss(feature, target, domain_label, proxy, scale,
                               matmul_dtype=jnp.bfloat16)
    assert jnp.allclose(loss_bf16, ref_bf16, rtol=1e-4, atol=1e-4), (loss_bf16, ref_bf16)

    print("KERNEL_OK")
</pallas_src>

<mosaic_0001>
module attributes {stable_mosaic.version = 11 : i64} {
  func.func @_proxy_dc_loss_kernel(%arg0: i32, %arg1: memref<8x32xf32, #tpu.memory_space<vmem>>, %arg2: memref<12x32xf32, #tpu.memory_space<vmem>>, %arg3: memref<8x1xi32, #tpu.memory_space<vmem>>, %arg4: memref<8x1xi32, #tpu.memory_space<vmem>>, %arg5: memref<1x12xi32, #tpu.memory_space<vmem>>, %arg6: memref<1x12xi32, #tpu.memory_space<vmem>>, %arg7: memref<1x8xf32, #tpu.memory_space<vmem>>) attributes {dimension_semantics = [#tpu.dimension_semantics<parallel>], iteration_bounds = array<i64: 1>, scalar_prefetch = 0 : i64, scratch_operands = 0 : i64, tpu.core_type = #tpu.core_type<tc>, window_params = [{transform_indices = @transform_0, window_bounds = array<i64: 8, 32>}, {pipeline_mode = #tpu.pipeline_mode<synchronous>, transform_indices = @transform_1, window_bounds = array<i64: 12, 32>}, {transform_indices = @transform_2, window_bounds = array<i64: 8, 1>}, {transform_indices = @transform_3, window_bounds = array<i64: 8, 1>}, {pipeline_mode = #tpu.pipeline_mode<synchronous>, transform_indices = @transform_4, window_bounds = array<i64: 1, 12>}, {pipeline_mode = #tpu.pipeline_mode<synchronous>, transform_indices = @transform_5, window_bounds = array<i64: 1, 12>}, {transform_indices = @transform_6, window_bounds = array<i64: 1, 8>}]} {
    %c0 = arith.constant 0 : index
    %c0_0 = arith.constant 0 : index
    %0 = vector.load %arg1[%c0, %c0_0] : memref<8x32xf32, #tpu.memory_space<vmem>>, vector<8x32xf32>
    %c0_1 = arith.constant 0 : index
    %c0_2 = arith.constant 0 : index
    %1 = vector.load %arg2[%c0_1, %c0_2] : memref<12x32xf32, #tpu.memory_space<vmem>>, vector<12x32xf32>
    %cst = arith.constant dense<0.000000e+00> : vector<8x12xf32>
    %2 = tpu.matmul %0, %1, %cst {dimension_numbers = #tpu.dot_dimension_numbers<[1], [1], [0], [0], [0, 0, 1, 0], [], []>} : vector<8x32xf32>, vector<12x32xf32>, vector<8x12xf32> -> vector<8x12xf32>
    %c0_3 = arith.constant 0 : index
    %c0_4 = arith.constant 0 : index
    %3 = vector.load %arg3[%c0_3, %c0_4] : memref<8x1xi32, #tpu.memory_space<vmem>>, vector<8x1xi32>
    %c0_5 = arith.constant 0 : index
    %c0_6 = arith.constant 0 : index
    %4 = vector.load %arg4[%c0_5, %c0_6] : memref<8x1xi32, #tpu.memory_space<vmem>>, vector<8x1xi32>
    %c0_7 = arith.constant 0 : index
    %c0_8 = arith.constant 0 : index
    %5 = vector.load %arg5[%c0_7, %c0_8] : memref<1x12xi32, #tpu.memory_space<vmem>>, vector<1x12xi32>
    %c0_9 = arith.constant 0 : index
    %c0_10 = arith.constant 0 : index
    %6 = vector.load %arg6[%c0_9, %c0_10] : memref<1x12xi32, #tpu.memory_space<vmem>>, vector<1x12xi32>
    %7 = tpu.iota {dimensions = array<i32: 1>} : vector<1x12xi32>
    %c4_i32 = arith.constant 4 : i32
    %8 = vector.broadcast %c4_i32 : i32 to vector<1x12xi32>
    %9 = arith.cmpi slt, %7, %8 : vector<1x12xi32>
    %10 = vector.broadcast %3 : vector<8x1xi32> to vector<8x12xi32>
    %11 = vector.broadcast %5 : vector<1x12xi32> to vector<8x12xi32>
    %12 = arith.cmpi ne, %10, %11 : vector<8x12xi32>
    %13 = vector.broadcast %4 : vector<8x1xi32> to vector<8x12xi32>
    %14 = vector.broadcast %6 : vector<1x12xi32> to vector<8x12xi32>
    %15 = arith.cmpi eq, %13, %14 : vector<8x12xi32>
    %16 = arith.andi %12, %15 : vector<8x12xi1>
    %cst_11 = arith.constant 1.200000e-05 : f32
    %17 = vector.broadcast %cst_11 : f32 to vector<8x12xf32>
    %18 = arith.cmpf oge, %2, %17 : vector<8x12xf32>
    %19 = arith.andi %16, %18 : vector<8x12xi1>
    %20 = vector.broadcast %9 : vector<1x12xi1> to vector<8x12xi1>
    %21 = arith.ori %20, %19 : vector<8x12xi1>
    %cst_12 = arith.constant 0xFF800000 : f32
    %22 = vector.broadcast %cst_12 : f32 to vector<8x12xf32>
    %23 = arith.select %21, %2, %22 : vector<8x12xi1>, vector<8x12xf32>
    %cst_13 = arith.constant dense<0xFF800000> : vector<8xf32>
    %24 = vector.multi_reduction <maximumf>, %23, %cst_13 [1] : vector<8x12xf32> to vector<8xf32>
    %25 = vector.shape_cast %24 : vector<8xf32> to vector<8x1xf32>
    %26 = vector.broadcast %25 : vector<8x1xf32> to vector<8x12xf32>
    %27 = arith.subf %23, %26 : vector<8x12xf32>
    %28 = math.exp %27 : vector<8x12xf32>
    %cst_14 = arith.constant dense<0.000000e+00> : vector<8xf32>
    %29 = vector.multi_reduction <add>, %28, %cst_14 [1] : vector<8x12xf32> to vector<8xf32>
    %30 = vector.shape_cast %29 : vector<8xf32> to vector<8x1xf32>
    %31 = math.log %30 : vector<8x1xf32>
    %32 = arith.addf %31, %25 : vector<8x1xf32>
    %33 = vector.broadcast %7 : vector<1x12xi32> to vector<8x12xi32>
    %34 = vector.broadcast %3 : vector<8x1xi32> to vector<8x12xi32>
    %35 = arith.cmpi eq, %33, %34 : vector<8x12xi32>
    %cst_15 = arith.constant 0.000000e+00 : f32
    %36 = vector.broadcast %cst_15 : f32 to vector<8x12xf32>
    %37 = arith.select %35, %2, %36 : vector<8x12xi1>, vector<8x12xf32>
    %cst_16 = arith.constant dense<0.000000e+00> : vector<8xf32>
    %38 = vector.multi_reduction <add>, %37, %cst_16 [1] : vector<8x12xf32> to vector<8xf32>
    %39 = vector.shape_cast %38 : vector<8xf32> to vector<8x1xf32>
    %40 = arith.subf %32, %39 : vector<8x1xf32>
    %41 = vector.shape_cast %40 : vector<8x1xf32> to vector<1x8xf32>
    %c0_17 = arith.constant 0 : index
    %c0_18 = arith.constant 0 : index
    %42 = vector.load %arg7[%c0_17, %c0_18] : memref<1x8xf32, #tpu.memory_space<vmem>>, vector<1x8xf32>
    tpu.vector_store %arg7[%c0_17, %c0_18], %41 {strides = array<i32>} : memref<1x8xf32, #tpu.memory_space<vmem>>, vector<1x8xf32>,
    return
  }
  func.func @transform_0(%arg0: i32) -> (i32, i32) {
    %c0_i32 = arith.constant 0 : i32
    %c0_i32_0 = arith.constant 0 : i32
    return %arg0, %c0_i32 : i32, i32
  }
  func.func @transform_1(%arg0: i32) -> (i32, i32) {
    %c0_i32 = arith.constant 0 : i32
    %c0_i32_0 = arith.constant 0 : i32
    %c0_i32_1 = arith.constant 0 : i32
    return %c0_i32, %c0_i32_0 : i32, i32
  }
  func.func @transform_2(%arg0: i32) -> (i32, i32) {
    %c0_i32 = arith.constant 0 : i32
    %c0_i32_0 = arith.constant 0 : i32
    return %arg0, %c0_i32 : i32, i32
  }
  func.func @transform_3(%arg0: i32) -> (i32, i32) {
    %c0_i32 = arith.constant 0 : i32
    %c0_i32_0 = arith.constant 0 : i32
    return %arg0, %c0_i32 : i32, i32
  }
  func.func @transform_4(%arg0: i32) -> (i32, i32) {
    %c0_i32 = arith.constant 0 : i32
    %c0_i32_0 = arith.constant 0 : i32
    %c0_i32_1 = arith.constant 0 : i32
    return %c0_i32, %c0_i32_0 : i32, i32
  }
  func.func @transform_5(%arg0: i32) -> (i32, i32) {
    %c0_i32 = arith.constant 0 : i32
    %c0_i32_0 = arith.constant 0 : i32
    %c0_i32_1 = arith.constant 0 : i32
    return %c0_i32, %c0_i32_0 : i32, i32
  }
  func.func @transform_6(%arg0: i32) -> (i32, i32) {
    %c0_i32 = arith.constant 0 : i32
    %c0_i32_0 = arith.constant 0 : i32
    return %c0_i32, %arg0 : i32, i32
  }
}

</mosaic_0001>

<bundles_post_ra>
// kernel: tpu_custom_call.1
= control target key start
LH: loop header
LB: loop body
LE: loop exit
PB: predicated region body
PF: predicated region fallthrough
CT: control target
= control target key end

     0   :  { %11 = vsyncpa [#allocation3], 0  ;;  %s266_s0 = inlined_call_operand.hbm [shape: f32[8,32], index: 0, kind: input, shape index: {}]   ;;  %s267_s1 = inlined_call_operand.vmem [shape: f32[12,32], index: 1, kind: input, shape index: {}]   ;;  %s268_s2 = inlined_call_operand.vmem [shape: s32[8,1], index: 2, kind: input, shape index: {}]   ;;  %s269_s3 = inlined_call_operand.vmem [shape: s32[8,1], index: 3, kind: input, shape index: {}]   ;;  %s270_s4 = inlined_call_operand.vmem [shape: s32[1,12], index: 4, kind: input, shape index: {}]   ;;  %s271_s5 = inlined_call_operand.vmem [shape: s32[1,12], index: 5, kind: input, shape index: {}]   ;;  %s272_s6 = inlined_call_operand.hbm [shape: f32[1,8], index: 6, kind: output, shape index: {}]  }
   0x1   :  { %12 = vsyncpa [#allocation4], 0  ;;  %s18_s23 = sshll.u32 %s266_s0, 4  ;;  %s201_s24 = smov [#allocation2]   ;;  %s19_s23 = int_to_ptr.hbm [resolvable:$true] %s18_s23 }
   0x2   :  { %s20_s25 = sshll.u32 %s201_s24, 4  ;;  %s21_s25 = int_to_ptr.vmem [resolvable:$true] %s20_s25 }
   0x3   :  { %23 = dma.hbm_to_vmem [thread:$0]  %s19_s23, 128, %s21_s25, [#allocation3]  }
   0x4   :  { %197 = dma.done.wait [#allocation3], 128  }
   0x5   :  { %198 = vsyncadd [#allocation3], 4294967168  ;;  %v202_v0 = vmov 0   ;;  %vm41_vm0 = vcmask 261120   ;;  %v40_v1 = vld [vmem:[%s267_s1 + $0x8] sm:$0xf]  ;;  %v75_v7 = vlaneseq }
   0x6   :  { %142 = vset.pattern.permute.xlu0 %v202_v0  ;;  %v71_v2 = vld [vmem:[%s268_s2] sm:$0xff]  ;;  %136 = vmatpush.xpose.msk.msra.mxu0 %vm41_vm0, %v40_v1  ;;  %vm95_vm3 = vcmask 97280   ;;  %s126_s12 = sshll.u32 %s272_s6, 4  ;;  %vm117_vm10 = vcmask 57344   ;;  %s127_s12 = int_to_ptr.hbm [resolvable:$true] %s126_s12 }
   0x7   :  { %79 = vperm.xlu0 %142, %v71_v2   ;;  %v39_v3 = vld [vmem:[%s267_s1] sm:$0xff]  ;;  %v76_v11 = vand.u32 127, %v75_v7  ;;  %s203_s1 = smov [#allocation5]  }
   0x8   :  { %v38_v4 = vld [vmem:[#allocation2] sm:$0xff] }
   0x9   :  { %v72_v5 = vld [vmem:[%s269_s3] sm:$0xff]  ;;  %vm77_vm5 = vcmp.lt.s32.totalorder %v76_v11, 4  ;;  %s124_s3 = sshll.u32 %s203_s1, 4  ;;  %s125_s3 = int_to_ptr.vmem [resolvable:$true] %s124_s3 }
   0xa   :  { %137 = vmatpush.xpose.msk.msra.mxu0 %vm41_vm0, %v39_v3  ;;  %v143_v8 = vld [vmem:[%s270_s4] ss:$0 sm:$0xff] }
   0xb   :  { %v144_v9 = vld [vmem:[%s271_s5] ss:$0 sm:$0xff] }
   0xd   :  { %138 = vmatmul.msk.f32.vlgmr.msra.gmra.mxu0 %vm41_vm0, %v38_v4 }
   0xf   :  { %84 = vperm.xlu0 %142, %v72_v5  }
  0x79   :  { %v80_v6 = vpop.permute.xlu0 %79 }
  0x7a   :  { %vm82_vm1 = vcmp.ne.s32.totalorder %v80_v6, %v143_v8  ;;  %vm108_vm4 = vcmp.eq.s32.totalorder %v76_v11, %v80_v6 }
  0x81   :  { %v85_v10 = vpop.permute.xlu0 %84 }
  0x82   :  { %vm87_vm2 = vcmp.eq.s32.totalorder %v85_v10, %v144_v9 }
  0x83   :  { %vm88_vm6 = vmand %vm82_vm1, %vm87_vm2 }
  0x8a   :  { %v68_v12 = vpop.f32.mrf.mxu0 }
  0x8b   :  { %vm89_vm7 = vcmp.ge.f32.partialorder %v68_v12, 1.2e-05  ;;  %v109_v13 = vsel %vm108_vm4, %v68_v12, 0.0 }
  0x8c   :  { %v110_v14 = vsel %vm95_vm3, %v109_v13, 0.0  ;;  %vm90_vm8 = vmand %vm88_vm6, %vm89_vm7 }
  0x8d   :  { %111 = vadd.xlane.f32.xlu2 %v110_v14  ;;  %vm93_vm9 = vmor %vm77_vm5, %vm90_vm8 }
  0x8e   :  { %v94_v15 = vsel %vm93_vm9, %v68_v12, -inf }
  0x8f   :  { %v96_v16 = vsel %vm95_vm3, %v94_v15, -inf }
  0x90   :  { %97 = vmax.xlane.f32.xlu1 %v96_v16 }
 0x100   :  { %v112_v26 = vpop.xlane.xlu2 %111 }
 0x103   :  { %v98_v17 = vpop.xlane.xlu1 %97 }
 0x104   :  { %v99_v18 = vsub.f32 %v94_v15, %v98_v17 }
 0x106   :  { %v100_v19 = vmul.f32 1.442695, %v99_v18 }
 0x108   :  { %145 = vpow2.f32 %v100_v19 }
 0x10e   :  { %v146_v20 = vpop.eup %145 }
 0x10f   :  { %v102_v21 = vsel %vm95_vm3, %v146_v20, 0.0 }
 0x110   :  { %103 = vadd.xlane.f32.xlu1 %v102_v21 }
 0x183   :  { %v104_v22 = vpop.xlane.xlu1 %103 }
 0x184   :  { %147 = vlog2.f32 %v104_v22 }
 0x18a   :  { %v148_v23 = vpop.eup %147 }
 0x18b   :  { %v106_v24 = vmul.f32 0.6931472, %v148_v23 }
 0x18d   :  { %v107_v25 = vadd.f32 %v106_v24, %v98_v17 }
 0x18f   :  { %v113_v27 = vsub.f32 %v107_v25, %v112_v26 }
 0x191   :  { %v115_v28 = vperm.slane %v113_v27, %v76_v11 }
 0x193   :  { %118 = vst.msk [vmem:[#allocation5] sm:$0x1] %vm117_vm10, %v115_v28 }
 0x194   :  { %129 = dma.vmem_to_hbm [thread:$0]  %s125_s3, 16, %s127_s12, [#allocation4]  }
 0x195   :  { %199 = dma.done.wait [#allocation4], 16  }
 0x196   :  { %200 = vsyncadd [#allocation4], 4294967280 }
 0x197   :  { %134 = vsyncpa [#allocation3], 1 }
 0x198   :  { %135 = vsyncpa [#allocation4], 1 }

</bundles_post_ra>
